<compile_context>
chip_gen: v6e
topology: v6e:2x2x1
jax: 0.10.0
libtpu: 0.0.40
codegen_flags: <defaults>
</compile_context>

<pallas_src>
import functools

import jax
import jax.numpy as jnp
from jax.experimental import pallas as pl
from jax.experimental.pallas import tpu as pltpu

_LANES = 128                            # TPU vreg lane width
_TARGET_BLOCK_BYTES = 2 * 1024 * 1024   # ~2 MiB per input block
_VMEM_LIMIT_BYTES = 32 * 1024 * 1024    # 2x(in)+2x(out) blocks + headroom


def _round_up(a, b):
    return (a + b - 1) // b * b


def _pick_row_tile(n_rows, row_bytes):
    """Rows per block: sized by bytes (amortize per-step overhead), a multiple
    of 8 (sublane tile), and small enough to keep >= 2 grid steps (megacore)."""
    tm = max(8, (_TARGET_BLOCK_BYTES // max(row_bytes, 1)) // 8 * 8)
    tm = min(tm, _round_up(n_rows, 8))
    if n_rows > 8:
        tm = min(tm, _round_up(pl.cdiv(n_rows, 2), 8))
    return max(tm, 8)


def _norm_packed_kernel(x_ref, o_ref, *, d, eps):
    """Lane-dense path for small power-of-two D.

    Block layout is (tm, 128): each 128-lane row holds 128//d complete
    length-d vectors, so loads/stores are fully dense.  Group-sum broadcasts
    use an XOR butterfly on the lane axis (pltpu.roll -> XLU slot)."""
    x = x_ref[...].astype(jnp.float32)                       # (tm, 128)
    lw = x.shape[-1]
    lane = jax.lax.broadcasted_iota(jnp.int32, (1, lw), 1)

    # For each butterfly step decide, from the rolled iota itself (so the
    # result is independent of the roll-direction convention), which of the
    # two rotations delivers lane (i ^ s) to lane i.
    steps = []
    s = 1
    while s < d:
        rolled_idx = pltpu.roll(lane, lw - s, axis=1)
        steps.append((s, rolled_idx == (lane ^ s)))
        s *= 2

    def group_allreduce(v):
        # After the loop every lane holds the sum over its aligned d-lane group.
        for s, take_a in steps:
            partner = jnp.where(take_a,
                                pltpu.roll(v, lw - s, axis=1),
                                pltpu.roll(v, s, axis=1))
            v = v + partner
        return v

    u = group_allreduce(x) * jnp.float32(1.0 / d)            # per-vector mean
    xc = x - u
    var = group_allreduce(xc * xc) * jnp.float32(1.0 / (d - 1))   # unbiased
    z = jnp.sqrt(jnp.maximum(var, 0.0))
    # exact reciprocal + multiply (approx=True only reaches ~1e-4 and would
    # break parity with the torch reference)
    inv = pl.reciprocal(z + jnp.float32(eps), approx=False)
    o_ref[...] = (xc * inv).astype(o_ref.dtype)


def _norm_rows_kernel(x_ref, o_ref, *, eps):
    """General path (D >= 128 or awkward D): one vector per block row."""
    x = x_ref[...].astype(jnp.float32)                       # (tm, d)
    d = x.shape[-1]
    u = jnp.sum(x, axis=-1, keepdims=True) * jnp.float32(1.0 / d)
    xc = x - u
    inv_dm1 = 1.0 / (d - 1) if d > 1 else float("nan")       # torch.std(ddof=1)
    var = jnp.sum(xc * xc, axis=-1, keepdims=True) * jnp.float32(inv_dm1)
    z = jnp.sqrt(jnp.maximum(var, 0.0))
    # tm reciprocals instead of tm*d divides (EUP has a single VLIW slot).
    inv = pl.reciprocal(z + jnp.float32(eps), approx=False)
    o_ref[...] = (xc * inv).astype(o_ref.dtype)


def _call(kernel, x2, tm):
    rows, cols = x2.shape
    return pl.pallas_call(
        kernel,
        out_shape=jax.ShapeDtypeStruct((rows, cols), x2.dtype),
        grid_spec=pltpu.PrefetchScalarGridSpec(
            num_scalar_prefetch=0,
            grid=(rows // tm,),
            in_specs=[pl.BlockSpec((tm, cols), lambda i: (i, 0))],
            out_specs=pl.BlockSpec((tm, cols), lambda i: (i, 0)),
        ),
        compiler_params=pltpu.CompilerParams(
            dimension_semantics=("parallel",),
            vmem_limit_bytes=_VMEM_LIMIT_BYTES,
        ),
    )(x2)


def normalization(x, eps=1e-12):
    """(x - mean(x, -1)) / (std(x, -1, unbiased) + eps), last-dim normalization.

    NOTE: a last dim of 1 yields NaN (unbiased std), matching torch.std."""
    orig_shape = x.shape
    d = orig_shape[-1]
    rows = 1
    for s in orig_shape[:-1]:
        rows *= s
    itemsize = jnp.dtype(x.dtype).itemsize

    use_packed = (2 <= d < _LANES) and (d & (d - 1)) == 0
    if use_packed:
        # Lane-dense packed layout: flatten and view as (packed_rows, 128).
        n = rows * d
        p_rows = pl.cdiv(n, _LANES)
        tm = _pick_row_tile(p_rows, _LANES * itemsize)
        p_rows_pad = _round_up(p_rows, tm)
        flat = x.reshape(n)
        pad = p_rows_pad * _LANES - n
        if pad:
            flat = jnp.pad(flat, (0, pad))       # zero groups -> output 0
        x2 = flat.reshape(p_rows_pad, _LANES)
        kernel = functools.partial(_norm_packed_kernel, d=d, eps=eps)
        out2 = _call(kernel, x2, tm)
        out_flat = out2.reshape(p_rows_pad * _LANES)
        if pad:
            out_flat = out_flat[:n]
        return out_flat.reshape(orig_shape)

    # General row-per-vector layout.
    # TODO(synk): extremely large D (block of 8*D elems > VMEM limit) would need
    # an in-row reduction grid axis; not needed for the module's typical shapes.
    tm = _pick_row_tile(rows, d * itemsize)
    rows_pad = _round_up(rows, tm)
    x2 = x.reshape(rows, d)
    if rows_pad != rows:
        x2 = jnp.pad(x2, ((0, rows_pad - rows), (0, 0)))
    kernel = functools.partial(_norm_rows_kernel, eps=eps)
    out2 = _call(kernel, x2, tm)
    if rows_pad != rows:
        out2 = out2[:rows]
    return out2.reshape(orig_shape)


if __name__ == "__main__":
    def reference(x, eps=1e-12):
        u = jnp.mean(x, axis=-1, keepdims=True)
        z = jnp.std(x, axis=-1, keepdims=True, ddof=1)   # torch.std is unbiased
        return (x - u) / (z + eps)

    # Small-D input (NCHW-like) -> packed lane-dense path.
    x = jax.random.normal(jax.random.PRNGKey(0), (2, 4, 16, 16), dtype=jnp.float32)
    out = jax.block_until_ready(normalization(x))
    assert out.shape == x.shape and out.dtype == x.dtype
    err = float(jnp.max(jnp.abs(out - reference(x))))
    assert err < 1e-5, f"packed path max error {err}"

    # Large-D input -> row-per-vector fallback path.
    xl = jax.random.normal(jax.random.PRNGKey(1), (2, 8, 256), dtype=jnp.float32)
    outl = jax.block_until_ready(normalization(xl))
    errl = float(jnp.max(jnp.abs(outl - reference(xl))))
    assert errl < 1e-5, f"rows path max error {errl}"

    # Odd (non power-of-two) small D -> rows path, correctness check.
    xo = jax.random.normal(jax.random.PRNGKey(2), (3, 5, 7), dtype=jnp.float32)
    outo = jax.block_until_ready(normalization(xo))
    erro = float(jnp.max(jnp.abs(outo - reference(xo))))
    assert erro < 1e-5, f"odd-D path max error {erro}"

    print("KERNEL_OK")
</pallas_src>

<mosaic_0001>
module attributes {stable_mosaic.version = 11 : i64} {
  func.func @_norm_packed_kernel(%arg0: i32, %arg1: memref<8x128xf32, #tpu.memory_space<vmem>>, %arg2: memref<8x128xf32, #tpu.memory_space<vmem>>) attributes {dimension_semantics = [#tpu.dimension_semantics<parallel>], iteration_bounds = array<i64: 2>, scalar_prefetch = 0 : i64, scratch_operands = 0 : i64, tpu.core_type = #tpu.core_type<tc>, window_params = [{transform_indices = @transform_0, window_bounds = array<i64: 8, 128>}, {transform_indices = @transform_1, window_bounds = array<i64: 8, 128>}]} {
    %c0 = arith.constant 0 : index
    %c0_0 = arith.constant 0 : index
    %0 = vector.load %arg1[%c0, %c0_0] : memref<8x128xf32, #tpu.memory_space<vmem>>, vector<8x128xf32>
    %1 = tpu.iota {dimensions = array<i32: 1>} : vector<1x128xi32>
    %c127_i32 = arith.constant 127 : i32
    %2 = tpu.dynamic_rotate %1 by %c127_i32 dim 1 : vector<1x128xi32>, i32 -> vector<1x128xi32>
    %c1_i32 = arith.constant 1 : i32
    %3 = vector.broadcast %c1_i32 : i32 to vector<1x128xi32>
    %4 = arith.xori %1, %3 : vector<1x128xi32>
    %5 = arith.cmpi eq, %2, %4 : vector<1x128xi32>
    %c126_i32 = arith.constant 126 : i32
    %6 = tpu.dynamic_rotate %1 by %c126_i32 dim 1 : vector<1x128xi32>, i32 -> vector<1x128xi32>
    %c2_i32 = arith.constant 2 : i32
    %7 = vector.broadcast %c2_i32 : i32 to vector<1x128xi32>
    %8 = arith.xori %1, %7 : vector<1x128xi32>
    %9 = arith.cmpi eq, %6, %8 : vector<1x128xi32>
    %c124_i32 = arith.constant 124 : i32
    %10 = tpu.dynamic_rotate %1 by %c124_i32 dim 1 : vector<1x128xi32>, i32 -> vector<1x128xi32>
    %c4_i32 = arith.constant 4 : i32
    %11 = vector.broadcast %c4_i32 : i32 to vector<1x128xi32>
    %12 = arith.xori %1, %11 : vector<1x128xi32>
    %13 = arith.cmpi eq, %10, %12 : vector<1x128xi32>
    %c120_i32 = arith.constant 120 : i32
    %14 = tpu.dynamic_rotate %1 by %c120_i32 dim 1 : vector<1x128xi32>, i32 -> vector<1x128xi32>
    %c8_i32 = arith.constant 8 : i32
    %15 = vector.broadcast %c8_i32 : i32 to vector<1x128xi32>
    %16 = arith.xori %1, %15 : vector<1x128xi32>
    %17 = arith.cmpi eq, %14, %16 : vector<1x128xi32>
    %c127_i32_1 = arith.constant 127 : i32
    %18 = tpu.dynamic_rotate %0 by %c127_i32_1 dim 1 : vector<8x128xf32>, i32 -> vector<8x128xf32>
    %c1_i32_2 = arith.constant 1 : i32
    %19 = tpu.dynamic_rotate %0 by %c1_i32_2 dim 1 : vector<8x128xf32>, i32 -> vector<8x128xf32>
    %20 = vector.shape_cast %5 : vector<1x128xi1> to vector<1x128xi1>
    %21 = vector.broadcast %20 : vector<1x128xi1> to vector<8x128xi1>
    %22 = arith.select %21, %18, %19 : vector<8x128xi1>, vector<8x128xf32>
    %23 = arith.addf %0, %22 : vector<8x128xf32>
    %c126_i32_3 = arith.constant 126 : i32
    %24 = tpu.dynamic_rotate %23 by %c126_i32_3 dim 1 : vector<8x128xf32>, i32 -> vector<8x128xf32>
    %c2_i32_4 = arith.constant 2 : i32
    %25 = tpu.dynamic_rotate %23 by %c2_i32_4 dim 1 : vector<8x128xf32>, i32 -> vector<8x128xf32>
    %26 = vector.shape_cast %9 : vector<1x128xi1> to vector<1x128xi1>
    %27 = vector.broadcast %26 : vector<1x128xi1> to vector<8x128xi1>
    %28 = arith.select %27, %24, %25 : vector<8x128xi1>, vector<8x128xf32>
    %29 = arith.addf %23, %28 : vector<8x128xf32>
    %c124_i32_5 = arith.constant 124 : i32
    %30 = tpu.dynamic_rotate %29 by %c124_i32_5 dim 1 : vector<8x128xf32>, i32 -> vector<8x128xf32>
    %c4_i32_6 = arith.constant 4 : i32
    %31 = tpu.dynamic_rotate %29 by %c4_i32_6 dim 1 : vector<8x128xf32>, i32 -> vector<8x128xf32>
    %32 = vector.shape_cast %13 : vector<1x128xi1> to vector<1x128xi1>
    %33 = vector.broadcast %32 : vector<1x128xi1> to vector<8x128xi1>
    %34 = arith.select %33, %30, %31 : vector<8x128xi1>, vector<8x128xf32>
    %35 = arith.addf %29, %34 : vector<8x128xf32>
    %c120_i32_7 = arith.constant 120 : i32
    %36 = tpu.dynamic_rotate %35 by %c120_i32_7 dim 1 : vector<8x128xf32>, i32 -> vector<8x128xf32>
    %c8_i32_8 = arith.constant 8 : i32
    %37 = tpu.dynamic_rotate %35 by %c8_i32_8 dim 1 : vector<8x128xf32>, i32 -> vector<8x128xf32>
    %38 = vector.shape_cast %17 : vector<1x128xi1> to vector<1x128xi1>
    %39 = vector.broadcast %38 : vector<1x128xi1> to vector<8x128xi1>
    %40 = arith.select %39, %36, %37 : vector<8x128xi1>, vector<8x128xf32>
    %41 = arith.addf %35, %40 : vector<8x128xf32>
    %cst = arith.constant 6.250000e-02 : f32
    %42 = vector.broadcast %cst : f32 to vector<8x128xf32>
    %43 = arith.mulf %41, %42 : vector<8x128xf32>
    %44 = arith.subf %0, %43 : vector<8x128xf32>
    %45 = arith.mulf %44, %44 : vector<8x128xf32>
    %c127_i32_9 = arith.constant 127 : i32
    %46 = tpu.dynamic_rotate %45 by %c127_i32_9 dim 1 : vector<8x128xf32>, i32 -> vector<8x128xf32>
    %c1_i32_10 = arith.constant 1 : i32
    %47 = tpu.dynamic_rotate %45 by %c1_i32_10 dim 1 : vector<8x128xf32>, i32 -> vector<8x128xf32>
    %48 = vector.shape_cast %5 : vector<1x128xi1> to vector<1x128xi1>
    %49 = vector.broadcast %48 : vector<1x128xi1> to vector<8x128xi1>
    %50 = arith.select %49, %46, %47 : vector<8x128xi1>, vector<8x128xf32>
    %51 = arith.addf %45, %50 : vector<8x128xf32>
    %c126_i32_11 = arith.constant 126 : i32
    %52 = tpu.dynamic_rotate %51 by %c126_i32_11 dim 1 : vector<8x128xf32>, i32 -> vector<8x128xf32>
    %c2_i32_12 = arith.constant 2 : i32
    %53 = tpu.dynamic_rotate %51 by %c2_i32_12 dim 1 : vector<8x128xf32>, i32 -> vector<8x128xf32>
    %54 = vector.shape_cast %9 : vector<1x128xi1> to vector<1x128xi1>
    %55 = vector.broadcast %54 : vector<1x128xi1> to vector<8x128xi1>
    %56 = arith.select %55, %52, %53 : vector<8x128xi1>, vector<8x128xf32>
    %57 = arith.addf %51, %56 : vector<8x128xf32>
    %c124_i32_13 = arith.constant 124 : i32
    %58 = tpu.dynamic_rotate %57 by %c124_i32_13 dim 1 : vector<8x128xf32>, i32 -> vector<8x128xf32>
    %c4_i32_14 = arith.constant 4 : i32
    %59 = tpu.dynamic_rotate %57 by %c4_i32_14 dim 1 : vector<8x128xf32>, i32 -> vector<8x128xf32>
    %60 = vector.shape_cast %13 : vector<1x128xi1> to vector<1x128xi1>
    %61 = vector.broadcast %60 : vector<1x128xi1> to vector<8x128xi1>
    %62 = arith.select %61, %58, %59 : vector<8x128xi1>, vector<8x128xf32>
    %63 = arith.addf %57, %62 : vector<8x128xf32>
    %c120_i32_15 = arith.constant 120 : i32
    %64 = tpu.dynamic_rotate %63 by %c120_i32_15 dim 1 : vector<8x128xf32>, i32 -> vector<8x128xf32>
    %c8_i32_16 = arith.constant 8 : i32
    %65 = tpu.dynamic_rotate %63 by %c8_i32_16 dim 1 : vector<8x128xf32>, i32 -> vector<8x128xf32>
    %66 = vector.shape_cast %17 : vector<1x128xi1> to vector<1x128xi1>
    %67 = vector.broadcast %66 : vector<1x128xi1> to vector<8x128xi1>
    %68 = arith.select %67, %64, %65 : vector<8x128xi1>, vector<8x128xf32>
    %69 = arith.addf %63, %68 : vector<8x128xf32>
    %cst_17 = arith.constant 0.0666666701 : f32
    %70 = vector.broadcast %cst_17 : f32 to vector<8x128xf32>
    %71 = arith.mulf %69, %70 : vector<8x128xf32>
    %cst_18 = arith.constant 0.000000e+00 : f32
    %72 = vector.broadcast %cst_18 : f32 to vector<8x128xf32>
    %73 = arith.maximumf %71, %72 : vector<8x128xf32>
    %74 = math.sqrt %73 : vector<8x128xf32>
    %cst_19 = arith.constant 9.99999996E-13 : f32
    %75 = vector.broadcast %cst_19 : f32 to vector<8x128xf32>
    %76 = arith.addf %74, %75 : vector<8x128xf32>
    %77 = tpu.reciprocal %76 : vector<8x128xf32> -> vector<8x128xf32>
    %78 = arith.mulf %44, %77 : vector<8x128xf32>
    %c0_20 = arith.constant 0 : index
    %c0_21 = arith.constant 0 : index
    %79 = vector.load %arg2[%c0_20, %c0_21] : memref<8x128xf32, #tpu.memory_space<vmem>>, vector<8x128xf32>
    tpu.vector_store %arg2[%c0_20, %c0_21], %78 {strides = array<i32>} : memref<8x128xf32, #tpu.memory_space<vmem>>, vector<8x128xf32>,
    return
  }
  func.func @transform_0(%arg0: i32) -> (i32, i32) {
    %c0_i32 = arith.constant 0 : i32
    %c0_i32_0 = arith.constant 0 : i32
    return %arg0, %c0_i32 : i32, i32
  }
  func.func @transform_1(%arg0: i32) -> (i32, i32) {
    %c0_i32 = arith.constant 0 : i32
    %c0_i32_0 = arith.constant 0 : i32
    return %arg0, %c0_i32 : i32, i32
  }
}

</mosaic_0001>

<bundles_post_ra>
// kernel: tpu_custom_call.1
= control target key start
LH: loop header
LB: loop body
LE: loop exit
PB: predicated region body
PF: predicated region fallthrough
CT: control target
= control target key end

     0   :  { %6 = vsyncpa [#allocation3], 0  ;;  %s712_s0 = inlined_call_operand.hbm [shape: f32[16,128], index: 0, kind: input, shape index: {}]   ;;  %s713_s1 = inlined_call_operand.hbm [shape: f32[16,128], index: 1, kind: output, shape index: {}]  }
   0x1   :  { %8 = vsyncpa [#allocation3 + $0x1], 0 }
   0x2   :  { %9 = vsyncpa [#allocation4], 0 }
   0x3   :  { %11 = vsyncpa [#allocation4 + $0x1], 0  ;;  %s509_s6 = smov 0   ;;  %s511_s7 = smov 0  }
   0x4   :  { %s513_s8 = smov 0   ;;  %s515_s9 = smov 0  }
   0x5 LB: > { %s530_s10 = sadd.s32 4294967295, %s486_s9   ;;  %s323_s11 = sadd.s32 4294967294, %s486_s9   ;;  %s486_s9 = sphi %s515_s9, %s738_s9   ;;  %s482_s8 = sphi %s513_s8, %s737_s8   ;;  %s478_s7 = sphi %s511_s7, %s736_s7   ;;  %s474_s6 = sphi %s509_s6, %s735_s6  }
   0x6   : > { %s534_s12 = sadd.s32 1, %s486_s9   ;;  %s24_s13 = sadd.s32 1, %s482_s8 }
   0x7   : > { %s21_s14 = ssub.s32 %s486_s9, %s534_s12  ;;  %p31_p0 = scmp.ne.s32.totalorder %s482_s8, %s478_s7 }
   0x8   : > { %p22_p1 = scmp.eq.s32.totalorder %s21_s14, 0  ;;  %p32_p2 = scmp.eq.s32.totalorder %s486_s9, 0 }
   0x9   : > { %p37_p3 = scmp.ne.s32.totalorder %s478_s7, %s474_s6  ;;  %p38_p4 = scmp.eq.s32.totalorder %s530_s10, 0 }
   0xa   : > { %s546_s15 = scalar_select %p22_p1, %s482_s8, %s24_s13  }
   0xb   : > { %p548_p5 = por %p32_p2, %p31_p0  ;;  %p552_p6 = por %p38_p4, %p37_p3 }
   0xc   : > { %p61_p7 = scmp.eq.s32.totalorder %s530_s10, 1  ;;  %p67_p8 = scmp.eq.s32.totalorder %s323_s11, 1 }
   0xd   : > { %s717_s17 = scalar_select %p552_p6, 1, 0 }
   0xe   : > { %p347_p10 = scmp.lt.s32.totalorder %s486_s9, 2  ;;  %p559_p11 = por %p61_p7, %p31_p0 }
   0xf   : > { %p563_p12 = por %p67_p8, %p37_p3  ;;  %s87_s20 = sand.u32 1, %s482_s8  }
  0x10   : > { %s718_s18 = scalar_select %p559_p11, 1, 0 }
  0x11   : > { %s719_s19 = scalar_select %p563_p12, 1, 0 }
  0x12   : > { %s327_s21 = sshll.u32 %s486_s9, 7  ;;  %s326_s22 = sshll.u32 %s87_s20, 3 }
  0x13   : > { %s572_s25 = scalar_lea.hbm %s712_s0, %s327_s21  ;;  %s91_s26 = scalar_lea.vmem [#allocation2], %s326_s22 }
  0x14   : > { %s98_s27 = sshll.u32 %s91_s26, 4  ;;  %p576_p13 = pnand %p347_p10, %p548_p5  ;;  %s580_s27 = int_to_ptr.vmem [resolvable:$true] %s98_s27 }
  0x15   : > { %s88_s29 = scalar_lea.sflag [#allocation3], %s87_s20  ;;  %s394_s30 = scalar_lea.hbm %s572_s25, 128 }
  0x16   : > { %p395_p2 = scmp.ne.s32.totalorder %s572_s25, %s394_s30  ;;  %p396_p3 = pneg %p576_p13 }
  0x17   : > { %s399_s4 = scalar_lea.hbm %s712_s0, 256  ;;  %p400_p5 = scmp.lt.s32.totalorder %s572_s25, %s712_s0 }
  0x18   : > { %p397_p4 = pnand %p396_p3, %p395_p2  ;;  %p401_p8 = scmp.lt.s32.totalorder %s399_s4, %s394_s30 }
  0x1a   : > { %p398_p7 = pneg %p397_p4  ;;  %p402_p10 = por %p401_p8, %p400_p5 }
  0x1c   : > { %p403_p9 = pnand %p402_p10, %p398_p7 }
  0x1e   : > { %406 = shalt.err (!%p403_p9)
}
  0x1f   : > { %s407_s13 = scalar_lea.vmem %s580_s27, 128  ;;  %s488_s14 = smov [#allocation2]  }
  0x20   : > { %p408_p0 = scmp.ne.s32.totalorder %s580_s27, %s407_s13  ;;  %s412_s16 = sshll.u32 %s488_s14, 4  ;;  %s413_s16 = int_to_ptr.vmem [resolvable:$false] %s412_s16 }
  0x21   : > { %s414_s20 = scalar_lea.vmem %s413_s16, 256  ;;  %p415_p4 = scmp.lt.s32.totalorder %s580_s27, %s413_s16 }
  0x22   : > { %p410_p1 = pnand %p408_p0, %p396_p3  ;;  %p416_p12 = scmp.lt.s32.totalorder %s414_s20, %s407_s13 }
  0x24   : > { %p411_p2 = pneg %p410_p1  ;;  %p417_p11 = por %p416_p12, %p415_p4 }
  0x26   : > { %p418_p6 = pnand %p417_p11, %p411_p2 }
  0x28   : > { %421 = shalt.err (!%p418_p6)
}
  0x29   : > { %342 = dma.hbm_to_vmem [thread:$0]  (!%p576_p13), %s572_s25, 128, %s580_s27, %s88_s29  }
  0x2a   : > { %p721_p9 = scmp.lt.s32.totalorder %s486_s9, 3  ;;  %p722_p7 = scmp.ge.s32.totalorder %s486_s9, 1 }
  0x2c   : > { %p104_p0 = pnand %p722_p7, %p721_p9 }
  0x2d   : > { %s607_s21 = sand.u32 (!%p104_p0), 1, %s478_s7   ;;  %p723_p6 = scmp.ne.s32.totalorder (!%p104_p0), %s717_s17, 0 }
  0x2e   : > { %107 = sbr.rel (%p104_p0) target bundleno = 1064 (0x428), region = 24  ;;  %s329_s22 = sshll.u32 (!%p104_p0), %s607_s21, 3 }
  0x2f   : > { %s110_s23 = scalar_lea.sflag (!%p104_p0), [#allocation3], %s607_s21  ;;  %s113_s24 = scalar_lea.vmem (!%p104_p0), [#allocation2], %s329_s22 }
  0x33   : > { %465 = dma.done.wait (%p723_p6), %s110_s23, 128  }
  0x34   : > { %467 = vsyncadd (%p723_p6), %s110_s23, 4294967168  ;;  %v133_v0 = vlaneseq  ;;  %s489_s25 = smov 127   ;;  %v618_v2 = vld [vmem:[%s113_s24] sm:$0xff]  ;;  %s490_s26 = smov 1   ;;  %v492_v7 = vmov 0  }
  0x35   : > { %153 = vrot.lane.b32.xlu1 %v618_v2, %s490_s26  ;;  %s491_s27 = smov 126   ;;  %s493_s17 = smov 2  }
  0x36   : > { %v134_v1 = vand.u32 127, %v133_v0  ;;  %v157_v3 = vshrl.u32 %v133_v0, 7  ;;  %s494_s28 = smov 124   ;;  %s495_s29 = smov 4  }
  0x37   : > { %s496_s30 = smov 120   ;;  %s497_s2 = smov 8  }
  0x38   : > { %135 = vrot.lane.b32.xlu0 %v134_v1, %s489_s25  ;;  %v137_v4 = vxor.u32 1, %v134_v1  ;;  %v158_v5 = vsub.s32 0, %v157_v3  ;;  %v141_v15 = vxor.u32 2, %v134_v1  ;;  %v145_v24 = vxor.u32 4, %v134_v1  ;;  %s332_s3 = sshll.u32 %s530_s10, 7  ;;  %s131_s4 = scalar_lea.vmem [#allocation5], %s329_s22 }
  0x39   : > { %139 = vrot.lane.b32.xlu1 %v134_v1, %s491_s27  ;;  %v149_v33 = vxor.u32 8, %v134_v1  ;;  %s253_s5 = sshll.u32 %s131_s4, 4  ;;  %s251_s14 = scalar_lea.hbm %s713_s1, %s332_s3  ;;  %s254_s5 = int_to_ptr.vmem [resolvable:$true] %s253_s5 }
  0x3a   : > { %s240_s16 = scalar_lea.sflag [#allocation4], %s607_s21  ;;  %s422_s20 = scalar_lea.vmem %s254_s5, 128 }
  0x3b   : > { %p423_p11 = scmp.ne.s32.totalorder %s254_s5, %s422_s20  ;;  %p732_p12 = scmp.ne.s32.totalorder %s718_s18, 0 }
  0x3c   : > { %151 = vrot.lane.b32.xlu0 %v618_v2, %s489_s25  ;;  %s498_s23 = smov [#allocation5]  }
  0x3d   : > { %p424_p13 = pnand %p423_p11, %p732_p12  ;;  %s426_s24 = sshll.u32 %s498_s23, 4  ;;  %s427_s24 = int_to_ptr.vmem [resolvable:$false] %s426_s24 }
  0x3e   : > { %s428_s10 = scalar_lea.vmem %s427_s24, 256  ;;  %p429_p3 = scmp.lt.s32.totalorder %s254_s5, %s427_s24 }
  0x3f   : > { %p425_p1 = pneg %p424_p13  ;;  %p430_p5 = scmp.lt.s32.totalorder %s428_s10, %s422_s20 }
  0x41   : > { %p431_p8 = por %p430_p5, %p429_p3 }
  0x43   : > { %p432_p10 = pnand %p431_p8, %p425_p1 }
  0xa7   : > { %v154_v10 = vpop.permute.xlu1 %153 }
  0xaa   : > { %v136_v6 = vpop.permute.xlu0 %135 }
  0xab   : > { %vm138_vm0 = vcmp.eq.s32.totalorder %v136_v6, %v137_v4  ;;  %v140_v16 = vpop.permute.xlu1 %139 }
  0xac   : > { %v155_v8 = vsel %vm138_vm0, 1, %v492_v7  ;;  %vm142_vm2 = vcmp.eq.s32.totalorder %v140_v16, %v141_v15 }
  0xad   : > { %v159_v9 = vrot.slane %v155_v8, %v158_v5  ;;  %v167_v17 = vsel %vm142_vm2, 1, %v492_v7 }
  0xae   : > { %v152_v11 = vpop.permute.xlu0 %151  ;;  %v171_v18 = vrot.slane %v167_v17, %v158_v5 }
  0xaf   : > { %vm625_vm1 = vcmp.eq.s32.totalorder %v159_v9, 1 }
  0xb0   : > { %v161_v13 = vsel %vm625_vm1, %v152_v11, %v154_v10  ;;  %vm635_vm3 = vcmp.eq.s32.totalorder %v171_v18, 1 }
  0xb1   : > { %v162_v14 = vadd.f32 %v161_v13, %v618_v2 }
  0xb3   : > { %165 = vrot.lane.b32.xlu1 %v162_v14, %s493_s17  ;;  %163 = vrot.lane.b32.xlu0 %v162_v14, %s491_s27 }
  0xb7   : > { %143 = vrot.lane.b32.xlu0 %v134_v1, %s494_s28 }
 0x125   : > { %v166_v20 = vpop.permute.xlu1 %165  ;;  %v164_v21 = vpop.permute.xlu0 %163 }
 0x126   : > { %v173_v22 = vsel %vm635_vm3, %v164_v21, %v166_v20 }
 0x127   : > { %v174_v23 = vadd.f32 %v173_v22, %v162_v14 }
 0x129   : > { %177 = vrot.lane.b32.xlu0 %v174_v23, %s495_s29  ;;  %175 = vrot.lane.b32.xlu1 %v174_v23, %s494_s28  ;;  %v144_v25 = vpop.permute.xlu0 %143 }
 0x12a   : > { %vm146_vm4 = vcmp.eq.s32.totalorder %v144_v25, %v145_v24 }
 0x12b   : > { %v179_v26 = vsel %vm146_vm4, 1, %v492_v7 }
 0x12c   : > { %v183_v27 = vrot.slane %v179_v26, %v158_v5 }
 0x12d   : > { %147 = vrot.lane.b32.xlu1 %v134_v1, %s496_s30 }
 0x12e   : > { %vm644_vm5 = vcmp.eq.s32.totalorder %v183_v27, 1 }
 0x19b   : > { %v176_v29 = vpop.permute.xlu1 %175  ;;  %v178_v30 = vpop.permute.xlu0 %177 }
 0x19c   : > { %v185_v31 = vsel %vm644_vm5, %v176_v29, %v178_v30 }
 0x19d   : > { %v186_v32 = vadd.f32 %v185_v31, %v174_v23 }
 0x19f   : > { %189 = vrot.lane.b32.xlu1 %v186_v32, %s497_s2  ;;  %187 = vrot.lane.b32.xlu0 %v186_v32, %s496_s30  ;;  %v148_v34 = vpop.permute.xlu1 %147 }
 0x1a0   : > { %vm150_vm6 = vcmp.eq.s32.totalorder %v148_v34, %v149_v33 }
 0x1a1   : > { %v191_v35 = vsel %vm150_vm6, 1, %v492_v7 }
 0x1a2   : > { %v195_v36 = vrot.slane %v191_v35, %v158_v5 }
 0x1a4   : > { %vm652_vm7 = vcmp.eq.s32.totalorder %v195_v36, 1 }
 0x211   : > { %v190_v38 = vpop.permute.xlu1 %189  ;;  %v188_v39 = vpop.permute.xlu0 %187 }
 0x212   : > { %v197_v40 = vsel %vm652_vm7, %v188_v39, %v190_v38 }
 0x213   : > { %v198_v41 = vadd.f32 %v197_v40, %v186_v32 }
 0x215   : > { %v199_v42 = vmul.f32 0.0625, %v198_v41 }
 0x217   : > { %v200_v43 = vsub.f32 %v618_v2, %v199_v42 }
 0x219   : > { %v201_v44 = vmul.f32 %v200_v43, %v200_v43 }
 0x21b   : > { %204 = vrot.lane.b32.xlu1 %v201_v44, %s490_s26  ;;  %202 = vrot.lane.b32.xlu0 %v201_v44, %s489_s25 }
 0x28d   : > { %v205_v45 = vpop.permute.xlu1 %204  ;;  %v203_v46 = vpop.permute.xlu0 %202 }
 0x28e   : > { %v206_v47 = vsel %vm625_vm1, %v203_v46, %v205_v45 }
 0x28f   : > { %v207_v48 = vadd.f32 %v206_v47, %v201_v44 }
 0x291   : > { %210 = vrot.lane.b32.xlu1 %v207_v48, %s493_s17  ;;  %208 = vrot.lane.b32.xlu0 %v207_v48, %s491_s27 }
 0x303   : > { %v211_v49 = vpop.permute.xlu1 %210  ;;  %v209_v50 = vpop.permute.xlu0 %208 }
 0x304   : > { %v212_v51 = vsel %vm635_vm3, %v209_v50, %v211_v49 }
 0x305   : > { %v213_v52 = vadd.f32 %v212_v51, %v207_v48 }
 0x307   : > { %216 = vrot.lane.b32.xlu1 %v213_v52, %s495_s29  ;;  %214 = vrot.lane.b32.xlu0 %v213_v52, %s494_s28 }
 0x379   : > { %v217_v53 = vpop.permute.xlu1 %216  ;;  %v215_v54 = vpop.permute.xlu0 %214 }
 0x37a   : > { %v218_v55 = vsel %vm644_vm5, %v215_v54, %v217_v53 }
 0x37b   : > { %v219_v56 = vadd.f32 %v218_v55, %v213_v52 }
 0x37d   : > { %222 = vrot.lane.b32.xlu1 %v219_v56, %s497_s2  ;;  %220 = vrot.lane.b32.xlu0 %v219_v56, %s496_s30 }
 0x3ef   : > { %v223_v57 = vpop.permute.xlu1 %222  ;;  %v221_v58 = vpop.permute.xlu0 %220 }
 0x3f0   : > { %v224_v59 = vsel %vm652_vm7, %v221_v58, %v223_v57 }
 0x3f1   : > { %v225_v60 = vadd.f32 %v224_v59, %v219_v56 }
 0x3f3   : > { %v226_v61 = vmul.f32 0.06666667, %v225_v60 }
 0x3f5   : > { %v227_v62 = vmax.f32 %v226_v61, 0.0 }
 0x3f7   : > { %390 = vrsqrt.f32 %v227_v62  ;;  %vm230_vm8 = vcmp.eq.f32.partialorder %v227_v62, inf  ;;  %v233_v1 = vand.u32 2147483648, %v227_v62  ;;  %vm232_vm9 = vcmp.eq.f32.partialorder %v227_v62, 0.0 }
 0x404   : > { %v391_v63 = vpop.eup %390 }
 0x405   : > { %v229_v0 = vmul.f32 %v391_v63, %v227_v62 }
 0x407   : > { %v231_v2 = vsel %vm230_vm8, %v227_v62, %v229_v0 }
 0x408   : > { %v234_v3 = vsel %vm232_vm9, %v233_v1, %v231_v2 }
 0x409   : > { %v235_v4 = vadd.f32 1e-12, %v234_v3 }
 0x40b   : > { %392 = vrcp.f32 %v235_v4 }
 0x418   : > { %v393_v5 = vpop.eup %392 }
 0x419   : > { %v237_v6 = vmul.f32 %v393_v5, %v200_v43 }
 0x41b   : > { %238 = vst [vmem:[%s131_s4] sm:$0xff] %v237_v6 }
 0x41c   : > { %435 = shalt.err (!%p432_p10)
}
 0x41d   : > { %s436_s22 = scalar_lea.hbm %s251_s14, 128  ;;  %s440_s26 = scalar_lea.hbm %s713_s1, 256 }
 0x41e   : > { %p437_p2 = scmp.ne.s32.totalorder %s251_s14, %s436_s22  ;;  %p441_p7 = scmp.lt.s32.totalorder %s251_s14, %s713_s1 }
 0x41f   : > { %p442_p0 = scmp.lt.s32.totalorder %s440_s26, %s436_s22 }
 0x420   : > { %p438_p4 = pnand %p437_p2, %p732_p12 }
 0x421   : > { %p443_p6 = por %p442_p0, %p441_p7 }
 0x422   : > { %p439_p9 = pneg %p438_p4 }
 0x424   : > { %p444_p11 = pnand %p443_p6, %p439_p9 }
 0x426   : > { %447 = shalt.err (!%p444_p11)
}
 0x427   : > { %337 = dma.vmem_to_hbm [thread:$0]  (%p732_p12), %s254_s5, 128, %s251_s14, %s240_s16  }
 0x428 PF: > { %s265_s28 = sand.u32 1, %s474_s6   ;;  %p733_p13 = scmp.ne.s32.totalorder %s719_s19, 0 }
 0x429   : > { %p734_p1 = scmp.ge.s32.totalorder %s486_s9, 2  ;;  %s266_s29 = scalar_lea.sflag [#allocation4], %s265_s28 }
 0x42b   : > { %p344_p3 = pnand %p734_p1, %p733_p13 }
 0x42d   : > { %p345_p5 = pneg %p344_p3 }
 0x42f   : > { %469 = dma.done.wait (%p345_p5), %s266_s29, 128  }
 0x430   : > { %471 = vsyncadd (%p345_p5), %s266_s29, 4294967168  ;;  %p14_p8 = scmp.ge.s32.totalorder %s534_s12, 4   ;;  %s735_s6 = smov %s478_s7 }
 0x431   : > { %s736_s7 = smov %s482_s8  ;;  %s737_s8 = smov %s546_s15 }
 0x432   : > { %s738_s9 = smov %s534_s12  ;;  %16 = sbr.rel (!%p14_p8) target bundleno = 5 (0x5), region = 69 }
 0x437   :  { %271 = vsyncpa [#allocation3], 1 }
 0x438   :  { %273 = vsyncpa [#allocation3 + $0x1], 1 }
 0x439   :  { %274 = vsyncpa [#allocation4], 1 }
 0x43a   :  { %276 = vsyncpa [#allocation4 + $0x1], 1 }

</bundles_post_ra>
